<compile_context>
chip_gen: v7x
topology: tpu7x:2x2x1
jax: 0.10.0
libtpu: 0.0.40
codegen_flags: <defaults>
</compile_context>

<pallas_src>
import functools

import jax
import jax.numpy as jnp
from jax.experimental import pallas as pl
from jax.experimental.pallas import tpu as pltpu


_NEG_BIAS_PAD = -1e9  # bias for invalid (padded) class columns


# ---------------------------------------------------------------------------
# Hardware introspection (Python / trace time only)
# ---------------------------------------------------------------------------
def _tpu_generation():
    """Returns (lane_align, num_parallel_cores, vmem_capacity_bytes)."""
    kind = ""
    try:
        kind = jax.devices()[0].device_kind.lower()
    except Exception:
        pass
    is_v6 = "v6" in kind
    is_v7 = "v7" in kind
    # 256-lane rounding only pays on 256x256 MXUs (v6e/v7x); v5e's MXU is 128^2.
    lane_align = 256 if (is_v6 or is_v7) else 128
    # v7x has 2 TensorCores per chip that split "parallel" grid axes.
    num_cores = 2 if is_v7 else 1
    vmem_cap = (64 if is_v7 else 128) * 2**20
    try:
        vmem_cap = int(pltpu.get_tpu_info().vmem_capacity_bytes)
    except Exception:
        pass
    return lane_align, num_cores, vmem_cap


# ---------------------------------------------------------------------------
# Padding helpers
# ---------------------------------------------------------------------------
def _round_up(n, m):
    return ((n + m - 1) // m) * m


def _round_lane(n, align):
    return 128 if n <= 128 else _round_up(n, align)


# ---------------------------------------------------------------------------
# Kernel
# ---------------------------------------------------------------------------
def _fnn2_kernel(x_ref, w1_ref, b1_ref, w2_ref, b2_ref, w3_ref, b3_ref, o_ref,
                 *, activation, lsoftmax):
    # x tile [TILE_B, Ip] (f32 or bf16), weights bf16, biases f32; accumulate f32.
    def act(h):
        if activation == "relu":
            return jnp.maximum(h, 0.0)
        return jax.nn.sigmoid(h)

    x = x_ref[...].astype(jnp.bfloat16)

    h1 = jnp.dot(x, w1_ref[...], preferred_element_type=jnp.float32) + b1_ref[...]
    h1 = act(h1).astype(jnp.bfloat16)

    h2 = jnp.dot(h1, w2_ref[...], preferred_element_type=jnp.float32) + b2_ref[...]
    h2 = act(h2).astype(jnp.bfloat16)

    logits = jnp.dot(h2, w3_ref[...], preferred_element_type=jnp.float32) + b3_ref[...]

    if lsoftmax:
        # Padded class columns carry a -1e9 bias, so no iota/where masking is
        # needed: they lose the max and exp() to zero.
        m = jnp.max(logits, axis=1, keepdims=True)
        e = jnp.exp(logits - m)
        lse = jnp.log(jnp.sum(e, axis=1, keepdims=True)) + m
        logits = logits - lse

    o_ref[...] = logits.astype(o_ref.dtype)


# ---------------------------------------------------------------------------
# One-time parameter preparation (hoisted out of the per-call path)
# ---------------------------------------------------------------------------
def prepare_params(params):
    """Transpose weights to [in, out], zero-pad to MXU-aligned shapes, cast weights
    to bf16 (biases stay f32). Padded class columns of b3 get -1e9 so log_softmax
    needs no in-kernel masking. Call ONCE at init, not per forward."""
    lane_align, _, _ = _tpu_generation()

    in_dim = params["w1"].shape[1]
    h1 = params["w1"].shape[0]
    h2 = params["w2"].shape[0]
    nc = params["w3"].shape[0]

    Ip = _round_lane(in_dim, lane_align)
    H1p = _round_lane(h1, lane_align)
    H2p = _round_lane(h2, lane_align)
    Cp = _round_lane(nc, lane_align)

    def pad2(a, rows, cols, dtype, cval=0.0):
        a = jnp.asarray(a, dtype)
        return jnp.pad(a, ((0, rows - a.shape[0]), (0, cols - a.shape[1])),
                       constant_values=cval)

    padded = {
        "w1": pad2(params["w1"].T, Ip, H1p, jnp.bfloat16),
        "w2": pad2(params["w2"].T, H1p, H2p, jnp.bfloat16),
        "w3": pad2(params["w3"].T, H2p, Cp, jnp.bfloat16),
        "b1": pad2(params["b1"][None, :], 1, H1p, jnp.float32),
        "b2": pad2(params["b2"][None, :], 1, H2p, jnp.float32),
        "b3": pad2(params["b3"][None, :], 1, Cp, jnp.float32, cval=_NEG_BIAS_PAD),
    }
    meta = {"num_classes": nc, "input_size": in_dim}
    return padded, meta


# ---------------------------------------------------------------------------
# Jitted forward over pre-padded params
# ---------------------------------------------------------------------------
@functools.partial(jax.jit, static_argnames=("activation", "lsoftmax", "num_classes"))
def _forward_padded(x, pp, *, activation, lsoftmax, num_classes):
    if activation not in ("relu", "sigmoid"):
        raise ValueError("Activation function not supported.")

    B, in_dim = x.shape
    Ip, H1p = pp["w1"].shape
    H2p = pp["w2"].shape[1]
    Cp = pp["w3"].shape[1]

    lane_align, num_cores, vmem_cap = _tpu_generation()
    usable_vmem = (vmem_cap * 3) // 4  # ~96 MiB on v5e/v6e, ~48 MiB on v7x

    # Resident (grid-invariant) VMEM: weights bf16, biases f32. BlockSpec inputs
    # are double-buffered by default even with constant index_maps -> count 2x.
    bytes_w = 2 * (Ip * H1p + H1p * H2p + H2p * Cp)
    bytes_b = 4 * (H1p + H2p + Cp)
    fixed_bytes = 2 * (bytes_w + bytes_b)

    # Per-batch-row VMEM: double-buffered x/out tiles + f32/bf16 intermediates.
    per_row = (2 * 4 * Ip            # x tile (worst case f32), double-buffered
               + 2 * 4 * Cp          # out tile f32, double-buffered
               + 2 * Ip              # bf16 copy of x inside the kernel
               + 6 * (H1p + H2p)     # f32 + bf16 h1/h2
               + 4 * Cp)             # f32 logits

    # TILE_B: biggest 16-row-aligned tile fitting the VMEM budget, capped at 1024;
    # on multi-TC chips keep >= num_cores grid steps so megacore splits the batch.
    avail_rows = max((usable_vmem - fixed_bytes) // per_row, 16)
    tile = max(16, min(1024, (avail_rows // 16) * 16))
    if num_cores > 1:
        per_core = _round_up(-(-B // num_cores), 16)
        tile = min(tile, max(per_core, 16))
    tile = min(tile, _round_up(max(B, 16), 16))
    TILE_B = max(16, tile)
    Bp = _round_up(B, TILE_B)

    needs_pad = (in_dim != Ip) or (Bp != B)
    if needs_pad:
        # Single fused cast+pad pass, only when the layout actually needs it.
        x_in = jnp.pad(x.astype(jnp.bfloat16), ((0, Bp - B), (0, Ip - in_dim)))
    else:
        # Already lane-aligned and tile-divisible: stream f32 straight in and
        # cast to bf16 on-chip (no extra HBM pass over the activations).
        x_in = x

    working = fixed_bytes + per_row * TILE_B
    vmem_limit = int(min(max(int(working * 1.5), 16 * 2**20), usable_vmem))

    flops = 2 * Bp * (Ip * H1p + H1p * H2p + H2p * Cp)
    transcendentals = 0
    if activation == "sigmoid":
        transcendentals += Bp * (H1p + H2p)
    if lsoftmax:
        transcendentals += Bp * Cp
    bytes_accessed = x_in.dtype.itemsize * Bp * Ip + bytes_w + bytes_b + 4 * Bp * Cp
    cost = pl.CostEstimate(flops=flops, transcendentals=transcendentals,
                           bytes_accessed=bytes_accessed)

    kernel = functools.partial(_fnn2_kernel, activation=activation, lsoftmax=lsoftmax)

    out_p = pl.pallas_call(
        kernel,
        out_shape=jax.ShapeDtypeStruct((Bp, Cp), jnp.float32),
        grid=(Bp // TILE_B,),
        in_specs=[
            pl.BlockSpec((TILE_B, Ip), lambda i: (i, 0)),   # x tile (pipelined)
            pl.BlockSpec((Ip, H1p), lambda i: (0, 0)),      # w1 (grid-invariant)
            pl.BlockSpec((1, H1p), lambda i: (0, 0)),       # b1
            pl.BlockSpec((H1p, H2p), lambda i: (0, 0)),     # w2
            pl.BlockSpec((1, H2p), lambda i: (0, 0)),       # b2
            pl.BlockSpec((H2p, Cp), lambda i: (0, 0)),      # w3
            pl.BlockSpec((1, Cp), lambda i: (0, 0)),        # b3
        ],
        out_specs=pl.BlockSpec((TILE_B, Cp), lambda i: (i, 0)),
        compiler_params=pltpu.CompilerParams(
            dimension_semantics=("parallel",),
            vmem_limit_bytes=vmem_limit,
        ),
        cost_estimate=cost,
    )(x_in, pp["w1"], pp["b1"], pp["w2"], pp["b2"], pp["w3"], pp["b3"])

    return out_p[:B, :num_classes]


def fnn_2layer_forward(x, padded_params, meta, *, activation="relu", lsoftmax=False):
    """x: [B, input_size] float32. padded_params/meta from prepare_params()."""
    return _forward_padded(
        x, padded_params,
        activation=activation, lsoftmax=lsoftmax,
        num_classes=int(meta["num_classes"]),
    )


# ---------------------------------------------------------------------------
# PyTorch-style init + pure-JAX reference
# ---------------------------------------------------------------------------
def init_params(key, input_size=5, n1=10, n2=10, num_classes=2):
    """Mimics PyTorch nn.Linear default init: U(-1/sqrt(fan_in), 1/sqrt(fan_in))."""
    ks = jax.random.split(key, 6)

    def linear(kw, kb, fan_in, fan_out):
        bound = 1.0 / jnp.sqrt(float(fan_in))
        w = jax.random.uniform(kw, (fan_out, fan_in), jnp.float32, -bound, bound)
        b = jax.random.uniform(kb, (fan_out,), jnp.float32, -bound, bound)
        return w, b

    w1, b1 = linear(ks[0], ks[1], input_size, n1)
    w2, b2 = linear(ks[2], ks[3], n1, n2)
    w3, b3 = linear(ks[4], ks[5], n2, num_classes)
    return {"w1": w1, "b1": b1, "w2": w2, "b2": b2, "w3": w3, "b3": b3}


def reference_forward(x, p, activation="relu", lsoftmax=False):
    act = (lambda h: jnp.maximum(h, 0.0)) if activation == "relu" else jax.nn.sigmoid
    h = act(x @ p["w1"].T + p["b1"])
    h = act(h @ p["w2"].T + p["b2"])
    out = h @ p["w3"].T + p["b3"]
    if lsoftmax:
        out = jax.nn.log_softmax(out, axis=1)
    return out


if __name__ == "__main__":
    key = jax.random.PRNGKey(0)
    kx, kp = jax.random.split(key)

    B, input_size, n1, n2, num_classes = 2, 5, 10, 10, 2
    x = jax.random.normal(kx, (B, input_size), jnp.float32)
    params = init_params(kp, input_size, n1, n2, num_classes)
    padded_params, meta = prepare_params(params)   # one-time, out of the hot path

    # Plain logits path (relu).
    out = fnn_2layer_forward(x, padded_params, meta, activation="relu", lsoftmax=False)
    out = jax.block_until_ready(out)
    ref = reference_forward(x, params, activation="relu", lsoftmax=False)
    assert out.shape == (B, num_classes)
    assert jnp.allclose(out, ref, atol=3e-2, rtol=3e-2), "relu path mismatch"

    # log_softmax path (exercises the -1e9 padded-class bias trick).
    out_ls = fnn_2layer_forward(x, padded_params, meta, activation="relu", lsoftmax=True)
    out_ls = jax.block_until_ready(out_ls)
    ref_ls = reference_forward(x, params, activation="relu", lsoftmax=True)
    assert jnp.allclose(out_ls, ref_ls, atol=3e-2, rtol=3e-2), "log_softmax path mismatch"

    # sigmoid path.
    out_sg = fnn_2layer_forward(x, padded_params, meta, activation="sigmoid", lsoftmax=False)
    out_sg = jax.block_until_ready(out_sg)
    ref_sg = reference_forward(x, params, activation="sigmoid", lsoftmax=False)
    assert jnp.allclose(out_sg, ref_sg, atol=3e-2, rtol=3e-2), "sigmoid path mismatch"

    print("KERNEL_OK")
</pallas_src>

<mosaic_0001>
module attributes {stable_mosaic.version = 11 : i64} {
  func.func @_fnn2_kernel(%arg0: i32, %arg1: memref<16x128xbf16, #tpu.memory_space<vmem>>, %arg2: memref<128x128xbf16, #tpu.memory_space<vmem>>, %arg3: memref<1x128xf32, #tpu.memory_space<vmem>>, %arg4: memref<128x128xbf16, #tpu.memory_space<vmem>>, %arg5: memref<1x128xf32, #tpu.memory_space<vmem>>, %arg6: memref<128x128xbf16, #tpu.memory_space<vmem>>, %arg7: memref<1x128xf32, #tpu.memory_space<vmem>>, %arg8: memref<16x128xf32, #tpu.memory_space<vmem>>) attributes {dimension_semantics = [#tpu.dimension_semantics<parallel>], iteration_bounds = array<i64: 1>, scalar_prefetch = 0 : i64, scratch_operands = 0 : i64, tpu.core_type = #tpu.core_type<tc>, window_params = [{transform_indices = @transform_0, window_bounds = array<i64: 16, 128>}, {pipeline_mode = #tpu.pipeline_mode<synchronous>, transform_indices = @transform_1, window_bounds = array<i64: 128, 128>}, {pipeline_mode = #tpu.pipeline_mode<synchronous>, transform_indices = @transform_2, window_bounds = array<i64: 1, 128>}, {pipeline_mode = #tpu.pipeline_mode<synchronous>, transform_indices = @transform_3, window_bounds = array<i64: 128, 128>}, {pipeline_mode = #tpu.pipeline_mode<synchronous>, transform_indices = @transform_4, window_bounds = array<i64: 1, 128>}, {pipeline_mode = #tpu.pipeline_mode<synchronous>, transform_indices = @transform_5, window_bounds = array<i64: 128, 128>}, {pipeline_mode = #tpu.pipeline_mode<synchronous>, transform_indices = @transform_6, window_bounds = array<i64: 1, 128>}, {transform_indices = @transform_7, window_bounds = array<i64: 16, 128>}]} {
    %c0 = arith.constant 0 : index
    %c0_0 = arith.constant 0 : index
    %0 = vector.load %arg1[%c0, %c0_0] : memref<16x128xbf16, #tpu.memory_space<vmem>>, vector<16x128xbf16>
    %c0_1 = arith.constant 0 : index
    %c0_2 = arith.constant 0 : index
    %1 = vector.load %arg2[%c0_1, %c0_2] : memref<128x128xbf16, #tpu.memory_space<vmem>>, vector<128x128xbf16>
    %cst = arith.constant dense<0.000000e+00> : vector<16x128xf32>
    %2 = tpu.matmul %0, %1, %cst {dimension_numbers = #tpu.dot_dimension_numbers<[1], [0], [0], [1], [0, 0, 1, 1], [], []>} : vector<16x128xbf16>, vector<128x128xbf16>, vector<16x128xf32> -> vector<16x128xf32>
    %c0_3 = arith.constant 0 : index
    %c0_4 = arith.constant 0 : index
    %3 = vector.load %arg3[%c0_3, %c0_4] : memref<1x128xf32, #tpu.memory_space<vmem>>, vector<1x128xf32>
    %4 = vector.broadcast %3 : vector<1x128xf32> to vector<16x128xf32>
    %5 = arith.addf %2, %4 : vector<16x128xf32>
    %cst_5 = arith.constant 0.000000e+00 : f32
    %6 = vector.broadcast %cst_5 : f32 to vector<16x128xf32>
    %7 = arith.maximumf %5, %6 : vector<16x128xf32>
    %8 = arith.truncf %7 : vector<16x128xf32> to vector<16x128xbf16>
    %c0_6 = arith.constant 0 : index
    %c0_7 = arith.constant 0 : index
    %9 = vector.load %arg4[%c0_6, %c0_7] : memref<128x128xbf16, #tpu.memory_space<vmem>>, vector<128x128xbf16>
    %cst_8 = arith.constant dense<0.000000e+00> : vector<16x128xf32>
    %10 = tpu.matmul %8, %9, %cst_8 {dimension_numbers = #tpu.dot_dimension_numbers<[1], [0], [0], [1], [0, 0, 1, 1], [], []>} : vector<16x128xbf16>, vector<128x128xbf16>, vector<16x128xf32> -> vector<16x128xf32>
    %c0_9 = arith.constant 0 : index
    %c0_10 = arith.constant 0 : index
    %11 = vector.load %arg5[%c0_9, %c0_10] : memref<1x128xf32, #tpu.memory_space<vmem>>, vector<1x128xf32>
    %12 = vector.broadcast %11 : vector<1x128xf32> to vector<16x128xf32>
    %13 = arith.addf %10, %12 : vector<16x128xf32>
    %cst_11 = arith.constant 0.000000e+00 : f32
    %14 = vector.broadcast %cst_11 : f32 to vector<16x128xf32>
    %15 = arith.maximumf %13, %14 : vector<16x128xf32>
    %16 = arith.truncf %15 : vector<16x128xf32> to vector<16x128xbf16>
    %c0_12 = arith.constant 0 : index
    %c0_13 = arith.constant 0 : index
    %17 = vector.load %arg6[%c0_12, %c0_13] : memref<128x128xbf16, #tpu.memory_space<vmem>>, vector<128x128xbf16>
    %cst_14 = arith.constant dense<0.000000e+00> : vector<16x128xf32>
    %18 = tpu.matmul %16, %17, %cst_14 {dimension_numbers = #tpu.dot_dimension_numbers<[1], [0], [0], [1], [0, 0, 1, 1], [], []>} : vector<16x128xbf16>, vector<128x128xbf16>, vector<16x128xf32> -> vector<16x128xf32>
    %c0_15 = arith.constant 0 : index
    %c0_16 = arith.constant 0 : index
    %19 = vector.load %arg7[%c0_15, %c0_16] : memref<1x128xf32, #tpu.memory_space<vmem>>, vector<1x128xf32>
    %20 = vector.broadcast %19 : vector<1x128xf32> to vector<16x128xf32>
    %21 = arith.addf %18, %20 : vector<16x128xf32>
    %c0_17 = arith.constant 0 : index
    %c0_18 = arith.constant 0 : index
    %22 = vector.load %arg8[%c0_17, %c0_18] : memref<16x128xf32, #tpu.memory_space<vmem>>, vector<16x128xf32>
    tpu.vector_store %arg8[%c0_17, %c0_18], %21 {strides = array<i32>} : memref<16x128xf32, #tpu.memory_space<vmem>>, vector<16x128xf32>,
    return
  }
  func.func @transform_0(%arg0: i32) -> (i32, i32) {
    %c0_i32 = arith.constant 0 : i32
    %c0_i32_0 = arith.constant 0 : i32
    return %arg0, %c0_i32 : i32, i32
  }
  func.func @transform_1(%arg0: i32) -> (i32, i32) {
    %c0_i32 = arith.constant 0 : i32
    %c0_i32_0 = arith.constant 0 : i32
    %c0_i32_1 = arith.constant 0 : i32
    return %c0_i32, %c0_i32_0 : i32, i32
  }
  func.func @transform_2(%arg0: i32) -> (i32, i32) {
    %c0_i32 = arith.constant 0 : i32
    %c0_i32_0 = arith.constant 0 : i32
    %c0_i32_1 = arith.constant 0 : i32
    return %c0_i32, %c0_i32_0 : i32, i32
  }
  func.func @transform_3(%arg0: i32) -> (i32, i32) {
    %c0_i32 = arith.constant 0 : i32
    %c0_i32_0 = arith.constant 0 : i32
    %c0_i32_1 = arith.constant 0 : i32
    return %c0_i32, %c0_i32_0 : i32, i32
  }
  func.func @transform_4(%arg0: i32) -> (i32, i32) {
    %c0_i32 = arith.constant 0 : i32
    %c0_i32_0 = arith.constant 0 : i32
    %c0_i32_1 = arith.constant 0 : i32
    return %c0_i32, %c0_i32_0 : i32, i32
  }
  func.func @transform_5(%arg0: i32) -> (i32, i32) {
    %c0_i32 = arith.constant 0 : i32
    %c0_i32_0 = arith.constant 0 : i32
    %c0_i32_1 = arith.constant 0 : i32
    return %c0_i32, %c0_i32_0 : i32, i32
  }
  func.func @transform_6(%arg0: i32) -> (i32, i32) {
    %c0_i32 = arith.constant 0 : i32
    %c0_i32_0 = arith.constant 0 : i32
    %c0_i32_1 = arith.constant 0 : i32
    return %c0_i32, %c0_i32_0 : i32, i32
  }
  func.func @transform_7(%arg0: i32) -> (i32, i32) {
    %c0_i32 = arith.constant 0 : i32
    %c0_i32_0 = arith.constant 0 : i32
    return %arg0, %c0_i32 : i32, i32
  }
}

</mosaic_0001>

<bundles_post_ra>
// kernel: _forward_padded.1
= control target key start
LH: loop header
LB: loop body
LE: loop exit
PB: predicated region body
PF: predicated region fallthrough
CT: control target
= control target key end

     0   :  { %12 = vsyncpa [#allocation3], 0  ;;  %s790_s0 = inlined_call_operand.vmem [shape: bf16[16,128], index: 0, kind: input, shape index: {}]   ;;  %s791_s1 = inlined_call_operand.hbm [shape: bf16[128,128], index: 1, kind: input, shape index: {}]   ;;  %s792_s2 = inlined_call_operand.vmem [shape: f32[1,128], index: 2, kind: input, shape index: {}]   ;;  %s793_s3 = inlined_call_operand.hbm [shape: bf16[128,128], index: 3, kind: input, shape index: {}]   ;;  %s794_s4 = inlined_call_operand.vmem [shape: f32[1,128], index: 4, kind: input, shape index: {}]   ;;  %s795_s5 = inlined_call_operand.hbm [shape: bf16[128,128], index: 5, kind: input, shape index: {}]   ;;  %s796_s6 = inlined_call_operand.vmem [shape: f32[1,128], index: 6, kind: input, shape index: {}]   ;;  %s797_s7 = inlined_call_operand.vmem [shape: f32[16,128], index: 7, kind: output, shape index: {}]  }
   0x1   :  { %13 = vsyncpa [#allocation5], 0  ;;  %s643_s24 = smov [#allocation4]   ;;  %s644_s26 = smov [#allocation2]  }
   0x2   :  { %s35_s25 = sshll.u32 %s643_s24, 4  ;;  %s21_s27 = sshll.u32 %s644_s26, 4  ;;  %s36_s25 = int_to_ptr.vmem [resolvable:$true] %s35_s25  ;;  %s690_s27 = int_to_ptr.vmem [resolvable:$true] %s21_s27 }
   0x3   :  { %s573_s30 = scalar_lea.hbm %s793_s3, 1024 }
   0x4   :  { %p574_p0 = scmp.ne.s32.totalorder %s793_s3, %s573_s30  ;;  %p577_p1 = scmp.lt.u32.totalorder %s573_s30, %s793_s3 }
   0x6   :  { %p579_p2 = pnand %p577_p1, %p574_p0 }
   0x8   :  { %582 = shalt.err (!%p579_p2)
}
   0x9   :  { %s583_s12 = scalar_lea.vmem %s36_s25, 1024  ;;  %p588_p4 = scmp.lt.s32.totalorder %s36_s25, %s36_s25 }
   0xa   :  { %p584_p3 = scmp.ne.s32.totalorder %s36_s25, %s583_s12  ;;  %p589_p5 = scmp.lt.s32.totalorder %s583_s12, %s583_s12 }
   0xc   :  { %p590_p6 = por %p589_p5, %p588_p4 }
   0xe   :  { %p591_p7 = pnand %p590_p6, %p584_p3 }
  0x10   :  { %594 = shalt.err (!%p591_p7)
}
  0x11   :  { %s645_s13 = smov 64   ;;  %s646_s14 = smov 4  }
  0x12   :  { %41 = dma.hbm_to_vmem [thread:$0]  %s793_s3, 1024, %s36_s25, [#allocation5], %s645_s13, %s645_s13, %s646_s14  }
  0x13   :  { %s595_s19 = scalar_lea.hbm %s791_s1, 1024 }
  0x14   :  { %p596_p8 = scmp.ne.s32.totalorder %s791_s1, %s595_s19  ;;  %p599_p9 = scmp.lt.u32.totalorder %s595_s19, %s791_s1 }
  0x16   :  { %p601_p10 = pnand %p599_p9, %p596_p8 }
  0x18   :  { %604 = shalt.err (!%p601_p10)
}
  0x19   :  { %s605_s24 = scalar_lea.vmem %s690_s27, 1024  ;;  %p610_p12 = scmp.lt.s32.totalorder %s690_s27, %s690_s27 }
  0x1a   :  { %p606_p11 = scmp.ne.s32.totalorder %s690_s27, %s605_s24  ;;  %p611_p13 = scmp.lt.s32.totalorder %s605_s24, %s605_s24 }
  0x1c   :  { %p612_p0 = por %p611_p13, %p610_p12 }
  0x1e   :  { %p613_p1 = pnand %p612_p0, %p606_p11 }
  0x20   :  { %616 = shalt.err (!%p613_p1)
}
  0x21   :  { %27 = dma.hbm_to_vmem [thread:$0]  %s791_s1, 1024, %s690_s27, [#allocation3], %s645_s13, %s645_s13, %s646_s14  }
  0x22   :  { %s647_s26 = smov [#allocation6]   ;;  %s617_s8 = scalar_lea.hbm %s795_s5, 1024 }
  0x23   :  { %s49_s28 = sshll.u32 %s647_s26, 4  ;;  %p618_p2 = scmp.ne.s32.totalorder %s795_s5, %s617_s8  ;;  %s50_s28 = int_to_ptr.vmem [resolvable:$true] %s49_s28 }
  0x24   :  { %p621_p3 = scmp.lt.u32.totalorder %s617_s8, %s795_s5 }
  0x26   :  { %p623_p4 = pnand %p621_p3, %p618_p2 }
  0x28   :  { %626 = shalt.err (!%p623_p4)
}
  0x29   :  { %s627_s15 = scalar_lea.vmem %s50_s28, 1024  ;;  %p632_p6 = scmp.lt.s32.totalorder %s50_s28, %s50_s28 }
  0x2a   :  { %p628_p5 = scmp.ne.s32.totalorder %s50_s28, %s627_s15  ;;  %p633_p7 = scmp.lt.s32.totalorder %s627_s15, %s627_s15 }
  0x2c   :  { %p634_p8 = por %p633_p7, %p632_p6 }
  0x2e   :  { %p635_p9 = pnand %p634_p8, %p628_p5 }
  0x30   :  { %638 = shalt.err (!%p635_p9)
}
  0x31   :  { %55 = dma.hbm_to_vmem [thread:$0]  %s795_s5, 1024, %s50_s28, [#allocation5], %s645_s13, %s645_s13, %s646_s14  }
  0x32   :  { %639 = dma.done.wait [#allocation3], 1024  }
  0x33   :  { %640 = vsyncadd [#allocation3], 4294966272 }
  0x34   :  { %641 = dma.done.wait [#allocation5], 2048  }
  0x35   :  { %642 = vsyncadd [#allocation5], 4294965248  ;;  %v648_v0 = vmov 0.0   ;;  %vm649_vm0 = vmmov 0   ;;  %v548_v1 = vld [vmem:[#allocation2] sm:$0xff]   ;;  %v549_v2 = vld [vmem:[#allocation2 + $0x8] sm:$0xff]  }
  0x36   :  { %481 = vmatprep.subr.bf16.mxu0 %v648_v0  ;;  %497 = vmatprep.mubr.msk.bf16.mxu0 %vm649_vm0, %v648_v0  ;;  %v550_v3 = vld [vmem:[#allocation2 + $0x10] sm:$0xff]   ;;  %v557_v4 = vld [vmem:[#allocation4] sm:$0xff]   ;;  %v551_v5 = vld [vmem:[#allocation2 + $0x18] sm:$0xff]  }
  0x37   :  { %501 = vmatprep.subr.bf16.mxu1 %v648_v0  ;;  %517 = vmatprep.mubr.msk.bf16.mxu1 %vm649_vm0, %v648_v0  ;;  %v558_v6 = vld [vmem:[#allocation4 + $0x8] sm:$0xff]   ;;  %v552_v7 = vld [vmem:[#allocation2 + $0x20] sm:$0xff]   ;;  %v559_v8 = vld [vmem:[#allocation4 + $0x10] sm:$0xff]  }
  0x38   :  { %482 = vmatpush3.bf16.msra.mxu0 %v548_v1  ;;  %502 = vmatpush3.bf16.msra.mxu1 %v557_v4  ;;  %v553_v9 = vld [vmem:[#allocation2 + $0x28] sm:$0xff]   ;;  %v560_v10 = vld [vmem:[#allocation4 + $0x18] sm:$0xff]   ;;  %v554_v11 = vld [vmem:[#allocation2 + $0x30] sm:$0xff]  }
  0x39   :  { %483 = vmatprep.subr.bf16.mxu0 %v648_v0  ;;  %503 = vmatprep.subr.bf16.mxu1 %v648_v0  ;;  %v561_v12 = vld [vmem:[#allocation4 + $0x20] sm:$0xff]   ;;  %v555_v13 = vld [vmem:[#allocation2 + $0x38] sm:$0xff]   ;;  %v562_v14 = vld [vmem:[#allocation4 + $0x28] sm:$0xff]  }
  0x3a   :  { %v556_v15 = vld [vmem:[%s790_s0] sm:$0xff]   ;;  %v563_v16 = vld [vmem:[#allocation4 + $0x30] sm:$0xff]   ;;  %v564_v17 = vld [vmem:[#allocation4 + $0x38] sm:$0xff]  }
  0x3b   :  { %v565_v18 = vld [vmem:[#allocation6] sm:$0xff]   ;;  %v566_v19 = vld [vmem:[#allocation6 + $0x8] sm:$0xff]   ;;  %v567_v20 = vld [vmem:[#allocation6 + $0x10] sm:$0xff]  }
  0x3c   :  { %484 = vmatpush3.bf16.msra.mxu0 %v549_v2  ;;  %504 = vmatpush3.bf16.msra.mxu1 %v558_v6  ;;  %v568_v21 = vld [vmem:[#allocation6 + $0x18] sm:$0xff]   ;;  %v569_v22 = vld [vmem:[#allocation6 + $0x20] sm:$0xff]   ;;  %v570_v23 = vld [vmem:[#allocation6 + $0x28] sm:$0xff]  }
  0x3d   :  { %485 = vmatprep.subr.bf16.mxu0 %v648_v0  ;;  %505 = vmatprep.subr.bf16.mxu1 %v648_v0  ;;  %v426_v24 = vld [vmem:[%s792_s2] ss:$0 sm:$0xff]  ;;  %v571_v34 = vld [vmem:[#allocation6 + $0x30] sm:$0xff]   ;;  %v572_v35 = vld [vmem:[#allocation6 + $0x38] sm:$0xff]  }
  0x3e   :  { %v436_v36 = vld [vmem:[%s794_s4] ss:$0 sm:$0xff] }
  0x3f   :  { %v445_v46 = vld [vmem:[%s796_s6] ss:$0 sm:$0xff] }
  0x40   :  { %486 = vmatpush3.bf16.msra.mxu0 %v550_v3  ;;  %506 = vmatpush3.bf16.msra.mxu1 %v559_v8 }
  0x41   :  { %487 = vmatprep.subr.bf16.mxu0 %v648_v0  ;;  %507 = vmatprep.subr.bf16.mxu1 %v648_v0 }
  0x44   :  { %488 = vmatpush3.bf16.msra.mxu0 %v551_v5  ;;  %508 = vmatpush3.bf16.msra.mxu1 %v560_v10 }
  0x45   :  { %489 = vmatprep.subr.bf16.mxu0 %v648_v0  ;;  %509 = vmatprep.subr.bf16.mxu1 %v648_v0 }
  0x48   :  { %490 = vmatpush3.bf16.msra.mxu0 %v552_v7  ;;  %510 = vmatpush3.bf16.msra.mxu1 %v561_v12 }
  0x49   :  { %491 = vmatprep.subr.bf16.mxu0 %v648_v0  ;;  %511 = vmatprep.subr.bf16.mxu1 %v648_v0 }
  0x4c   :  { %492 = vmatpush3.bf16.msra.mxu0 %v553_v9  ;;  %512 = vmatpush3.bf16.msra.mxu1 %v562_v14 }
  0x4d   :  { %493 = vmatprep.subr.bf16.mxu0 %v648_v0  ;;  %513 = vmatprep.subr.bf16.mxu1 %v648_v0 }
  0x50   :  { %494 = vmatpush3.bf16.msra.mxu0 %v554_v11  ;;  %514 = vmatpush3.bf16.msra.mxu1 %v563_v16 }
  0x51   :  { %495 = vmatprep.subr.bf16.mxu0 %v648_v0  ;;  %515 = vmatprep.subr.bf16.mxu1 %v648_v0 }
  0x54   :  { %496 = vmatpush3.bf16.msra.mxu0 %v555_v13  ;;  %516 = vmatpush3.bf16.msra.mxu1 %v564_v17 }
  0x55   :  { %521 = vmatprep.subr.bf16.mxu0 %v648_v0 }
  0x57   :  { %498 = vmatmul.mubr.bf16.vlgmr.msra.gmra.mrb[0].mxu0 %v556_v15 }
  0x58   :  { %537 = vmatprep.mubr.msk.bf16.mxu0 %vm649_vm0, %v648_v0  ;;  %522 = vmatpush3.bf16.msra.mxu0 %v565_v18 }
  0x59   :  { %523 = vmatprep.subr.bf16.mxu0 %v648_v0 }
  0x5c   :  { %524 = vmatpush3.bf16.msra.mxu0 %v566_v19 }
  0x5d   :  { %525 = vmatprep.subr.bf16.mxu0 %v648_v0 }
  0x60   :  { %526 = vmatpush3.bf16.msra.mxu0 %v567_v20 }
  0x61   :  { %527 = vmatprep.subr.bf16.mxu0 %v648_v0 }
  0x64   :  { %528 = vmatpush3.bf16.msra.mxu0 %v568_v21 }
  0x65   :  { %529 = vmatprep.subr.bf16.mxu0 %v648_v0 }
  0x68   :  { %530 = vmatpush3.bf16.msra.mxu0 %v569_v22 }
  0x69   :  { %531 = vmatprep.subr.bf16.mxu0 %v648_v0 }
  0x6c   :  { %532 = vmatpush3.bf16.msra.mxu0 %v570_v23 }
  0x6d   :  { %533 = vmatprep.subr.bf16.mxu0 %v648_v0 }
  0x70   :  { %534 = vmatpush3.bf16.msra.mxu0 %v571_v34 }
  0x71   :  { %535 = vmatprep.subr.bf16.mxu0 %v648_v0 }
  0x74   :  { %536 = vmatpush3.bf16.msra.mxu0 %v572_v35 }
 0x12a   :  { %v181_v25 = vpop.f32.mrb[0].mxu0 }
 0x12b   :  { %v182_v26 = vadd.f32 %v426_v24, %v181_v25  ;;  %v499_v27 = vpop.f32.mrb[1].mxu0 }
 0x12c   :  { %v184_v28 = vpop.f32.mrb[2].mxu0 }
 0x12d   :  { %v185_v29 = vadd.f32 %v426_v24, %v184_v28  ;;  %v500_v30 = vpop.f32.mrb[3].mxu0  ;;  %v188_v31 = vmax.f32 %v182_v26, 0.0 }
 0x12f   :  { %v189_v32 = vmax.f32 %v185_v29, 0.0 }
 0x131   :  { %v190_v33 = vpack.c.bf16 %v189_v32, %v188_v31 }
 0x133   :  { %518 = vmatmul.mubr.bf16.vlgmr.msra.gmra.mrb[0].mxu1 %v190_v33 }
 0x206   :  { %v296_v37 = vpop.f32.mrb[0].mxu1 }
 0x207   :  { %v297_v38 = vadd.f32 %v436_v36, %v296_v37  ;;  %v519_v39 = vpop.f32.mrb[1].mxu1 }
 0x208   :  { %v299_v40 = vpop.f32.mrb[2].mxu1 }
 0x209   :  { %v300_v41 = vadd.f32 %v436_v36, %v299_v40  ;;  %v520_v42 = vpop.f32.mrb[3].mxu1  ;;  %v303_v43 = vmax.f32 %v297_v38, 0.0 }
 0x20b   :  { %v304_v44 = vmax.f32 %v300_v41, 0.0 }
 0x20d   :  { %v305_v45 = vpack.c.bf16 %v304_v44, %v303_v43 }
 0x20f   :  { %538 = vmatmul.mubr.bf16.vlgmr.msra.gmra.mrb[4].mxu0 %v305_v45 }
 0x2e2   :  { %v411_v47 = vpop.f32.mrb[4].mxu0 }
 0x2e3   :  { %v412_v48 = vadd.f32 %v445_v46, %v411_v47  ;;  %v539_v49 = vpop.f32.mrb[5].mxu0 }
 0x2e4   :  { %v414_v50 = vpop.f32.mrb[6].mxu0 }
 0x2e5   :  { %418 = vst [vmem:[%s797_s7] sm:$0xff] %v412_v48  ;;  %v415_v51 = vadd.f32 %v445_v46, %v414_v50  ;;  %v540_v52 = vpop.f32.mrb[7].mxu0 }
 0x2e7   :  { %419 = vst [vmem:[%s797_s7 + $0x8] sm:$0xff] %v415_v51 }
 0x2e8   :  { %424 = vsyncpa [#allocation3], 1 }
 0x2e9   :  { %425 = vsyncpa [#allocation5], 1 }

</bundles_post_ra>
